<compile_context>
chip_gen: v7x
topology: tpu7x:2x2x1
jax: 0.10.0
libtpu: 0.0.40
codegen_flags: <defaults>
</compile_context>

<pallas_src>
import functools

import jax
import jax.numpy as jnp
from jax.experimental import pallas as pl
from jax.experimental.pallas import tpu as pltpu


def _round_up(x, m):
    return (x + m - 1) // m * m


def _sft_mean_loss_kernel(logits_ref, labels_ref, mask_ref,
                          lp_ref, cnt_ref,
                          m_sc, s_sc, c_sc,
                          *, v_tile, v_total, need_v_mask):
    t = pl.program_id(1)
    v = pl.program_id(2)
    nv = pl.num_programs(2)

    @pl.when(jnp.logical_and(t == 0, v == 0))
    def _init_batch():
        lp_ref[...] = jnp.zeros_like(lp_ref)
        cnt_ref[...] = jnp.zeros_like(cnt_ref)

    @pl.when(v == 0)
    def _init_vocab_loop():
        m_sc[...] = jnp.full_like(m_sc, -jnp.inf)
        s_sc[...] = jnp.zeros_like(s_sc)
        c_sc[...] = jnp.zeros_like(c_sc)

    x = logits_ref[...]                               # (1, tt, Vt) native dtype
    lbl = labels_ref[...]                             # (1, tt, 1) int32

    # Lane iota for this vocab tile only (never a full (1,tt,Vt) iota).
    col = jax.lax.broadcasted_iota(jnp.int32, (1, 1, v_tile), 2) + v * v_tile

    if need_v_mask:                                   # static: last vocab tile ragged
        x_m = jnp.where(col < v_total, x, jnp.array(-jnp.inf, x.dtype))
    else:
        x_m = x

    # ---- online logsumexp over vocab tiles (running max + rescaled sum) ----
    tile_max = jnp.max(x_m, axis=-1, keepdims=True).astype(jnp.float32)
    m_prev = m_sc[...]
    m_new = jnp.maximum(m_prev, tile_max)
    p = jnp.exp(x_m.astype(jnp.float32) - m_new)      # masked lanes -> exp(-inf) = 0
    s_sc[...] = jnp.exp(m_prev - m_new) * s_sc[...] + jnp.sum(p, axis=-1, keepdims=True)
    m_sc[...] = m_new

    # ---- gather the label logit: one-hot select in native dtype (exact) ----
    hit = col == lbl                                  # broadcast -> (1, tt, Vt)
    c_sc[...] += jnp.sum(jnp.where(hit, x, jnp.array(0, x.dtype)),
                         axis=-1, keepdims=True).astype(jnp.float32)

    @pl.when(v == nv - 1)
    def _finish_time_tile():
        lse = m_sc[...] + jnp.log(s_sc[...])          # (1, tt, 1)
        token_lp = c_sc[...] - lse
        msk = mask_ref[...]                           # (1, tt, 1) f32, padded with 0
        # where (not multiply): garbage rows past the sequence end never leak
        lp_ref[...] += jnp.sum(jnp.where(msk > 0.0, token_lp, 0.0),
                               axis=1, keepdims=True)
        cnt_ref[...] += jnp.sum(msk, axis=1, keepdims=True)


def _vmem_capacity_bytes():
    try:
        info = pltpu.get_tpu_info()
        cap = getattr(info, "vmem_capacity_bytes", None)
        if cap:
            return int(cap)
    except Exception:
        pass
    return 64 * 1024 * 1024        # conservative fallback (v7x per-core VMEM)


def sft_mean_loss(logits, labels, mask, *, beta: float = 2.0,
                  time_tile=None, vocab_tile=None):
    """Pallas forward of SFTMeanLoss. Returns a scalar f32 loss."""
    B, T, V = logits.shape
    assert T >= 2, "need at least 2 tokens (labels are shifted by one)"
    t_valid = T - 1
    itemsize = jnp.dtype(logits.dtype).itemsize
    sub = max(8, 32 // itemsize)                      # sublane packing: f32=8, bf16=16

    # ---------------- tile selection from queried VMEM capacity ----------------
    vmem_cap = _vmem_capacity_bytes()
    # ~1/12 of VMEM per logits pipeline buffer: 2x double buffering plus ~2x for
    # the f32 upcast temporaries stays well under the scoped limit on v5e/v6e/v7x.
    budget = max(1 << 20, min(12 << 20, vmem_cap // 12))

    row_bytes = V * itemsize                          # one (batch=1) time row
    if row_bytes * sub <= budget:
        v_tile = V                                    # full vocab per block
        tt = max(sub, (budget // row_bytes) // sub * sub)
        tt = min(tt, _round_up(t_valid, sub))
    else:
        # vocab-tiled path: time stays at the sublane granule, lanes maximized
        # (largest contiguous DMA chunks) within the byte budget.
        v_tile = max(128, (budget // (sub * itemsize)) // 128 * 128)
        v_tile = min(v_tile, _round_up(V, 128))
        tt = sub

    if vocab_tile is not None:                        # test / tuning override
        v_tile = min(int(vocab_tile), V)
    if time_tile is not None:
        tt = _round_up(int(time_tile), sub)

    # Don't let a single time block run past the logits time extent unless T is tiny.
    if tt > T and (T // sub) * sub >= sub:
        tt = (T // sub) * sub

    nv = pl.cdiv(V, v_tile)
    nt = pl.cdiv(t_valid, tt)
    L = nt * tt
    need_v_mask = (V % v_tile) != 0
    assert nv == 1 or v_tile % 128 == 0, "vocab tile must be a multiple of 128 when tiling V"

    # ------------- small side arrays: shift + pad + sublane-major layout -------------
    labels_p = jnp.pad(labels[:, 1:].astype(jnp.int32),
                       ((0, 0), (0, L - t_valid)))[..., None]          # (B, L, 1)
    mask_p = jnp.pad((mask[:, 1:] != 0).astype(jnp.float32),
                     ((0, 0), (0, L - t_valid)))[..., None]            # (B, L, 1)

    # logits passed whole (no HBM copy/cast); pad time only in the tiny-T corner case.
    logits_in = logits
    if tt > T:
        logits_in = jnp.pad(logits, ((0, 0), (0, tt - T), (0, 0)))

    kernel = functools.partial(_sft_mean_loss_kernel,
                               v_tile=v_tile, v_total=V, need_v_mask=need_v_mask)

    block_bytes = tt * v_tile * itemsize
    vmem_limit = int(min(max(2 * block_bytes + 2 * tt * v_tile * 4 + (4 << 20),
                             32 << 20),
                         vmem_cap * 3 // 4))

    cost = pl.CostEstimate(
        flops=int(8 * B * t_valid * V),
        transcendentals=int(B * t_valid * V),
        bytes_accessed=int(B * T * V * itemsize + 2 * B * L * 4 + 2 * B * 4),
    )

    # TODO(synk): skip fully-padded time tiles via scalar prefetch (per-batch valid
    # length) and consider pl.Buffered(3) on the logits spec on v5e/v6e if xprof
    # shows exposed DMA.
    lp, cnt = pl.pallas_call(
        kernel,
        out_shape=(jax.ShapeDtypeStruct((B, 1, 1), jnp.float32),
                   jax.ShapeDtypeStruct((B, 1, 1), jnp.float32)),
        grid_spec=pltpu.PrefetchScalarGridSpec(
            num_scalar_prefetch=0,
            grid=(B, nt, nv),
            in_specs=[
                pl.BlockSpec((1, tt, v_tile), lambda b, t, v: (b, t, v)),  # logits
                pl.BlockSpec((1, tt, 1), lambda b, t, v: (b, t, 0)),       # labels
                pl.BlockSpec((1, tt, 1), lambda b, t, v: (b, t, 0)),       # mask
            ],
            out_specs=(
                pl.BlockSpec((1, 1, 1), lambda b, t, v: (b, 0, 0)),        # sum logp
                pl.BlockSpec((1, 1, 1), lambda b, t, v: (b, 0, 0)),        # count
            ),
            scratch_shapes=[
                pltpu.VMEM((1, tt, 1), jnp.float32),   # running max
                pltpu.VMEM((1, tt, 1), jnp.float32),   # running sum of exp
                pltpu.VMEM((1, tt, 1), jnp.float32),   # chosen (label) logit
            ],
        ),
        compiler_params=pltpu.CompilerParams(
            dimension_semantics=("parallel", "arbitrary", "arbitrary"),
            vmem_limit_bytes=vmem_limit),
        cost_estimate=cost,
    )(logits_in, labels_p, mask_p)

    valid_lp = lp[:, 0, 0] / cnt[:, 0, 0]
    return -jnp.mean(jax.nn.log_sigmoid(beta * valid_lp))


def _reference(logits, labels, mask, beta=2.0):
    """Pure-JAX mirror of the PyTorch SFTMeanLoss.forward."""
    labels_s = labels[:, 1:]
    logits_s = logits[:, :-1, :].astype(jnp.float32)
    mask_s = mask[:, 1:] != 0
    logp = jax.nn.log_softmax(logits_s, axis=-1)
    chosen = jnp.take_along_axis(logp, labels_s[..., None], axis=-1)[..., 0]
    chosen = jnp.where(mask_s, chosen, 0.0)
    valid = chosen.sum(axis=1) / mask_s.sum(axis=1)
    return -jnp.mean(jax.nn.log_sigmoid(beta * valid))


if __name__ == "__main__":
    key = jax.random.PRNGKey(0)
    k1, k2, k3, k4, k5, k6 = jax.random.split(key, 6)

    # --- case 1: small f32, auto tiling (single vocab tile, single time tile) ---
    B, T, V = 2, 8, 32
    logits = jax.random.normal(k1, (B, T, V), dtype=jnp.float32)
    labels = jax.random.randint(k2, (B, T), 0, V, dtype=jnp.int32)
    mask = (jax.random.uniform(k3, (B, T)) > 0.25).astype(jnp.float32)
    mask = mask.at[:, 1].set(1.0)   # >=1 valid token per row after the shift

    loss = sft_mean_loss(logits, labels, mask, beta=2.0)
    jax.block_until_ready(loss)
    ref = _reference(logits, labels, mask, beta=2.0)
    assert jnp.allclose(loss, ref, atol=1e-4, rtol=1e-4), (loss, ref)

    # --- case 2: bf16, forced vocab tiling -> online logsumexp + ragged last
    #     vocab tile (lane mask) + partial time edge block are all exercised ---
    B2, T2, V2 = 2, 21, 384
    logits2 = (jax.random.normal(k4, (B2, T2, V2), dtype=jnp.float32) * 2.0
               ).astype(jnp.bfloat16)
    labels2 = jax.random.randint(k5, (B2, T2), 0, V2, dtype=jnp.int32)
    mask2 = (jax.random.uniform(k6, (B2, T2)) > 0.3).astype(jnp.float32)
    mask2 = mask2.at[:, 1].set(1.0)

    loss2 = sft_mean_loss(logits2, labels2, mask2, beta=2.0,
                          time_tile=16, vocab_tile=256)
    jax.block_until_ready(loss2)
    ref2 = _reference(logits2, labels2, mask2, beta=2.0)
    assert jnp.allclose(loss2, ref2, atol=2e-3, rtol=2e-3), (loss2, ref2)

    print("KERNEL_OK")
</pallas_src>

<mosaic_0001>
module attributes {stable_mosaic.version = 11 : i64} {
  func.func @_sft_mean_loss_kernel(%arg0: i32, %arg1: i32, %arg2: i32, %arg3: memref<1x8x32xf32, #tpu.memory_space<vmem>>, %arg4: memref<1x8x1xi32, #tpu.memory_space<vmem>>, %arg5: memref<1x8x1xf32, #tpu.memory_space<vmem>>, %arg6: memref<1x1x1xf32, #tpu.memory_space<vmem>>, %arg7: memref<1x1x1xf32, #tpu.memory_space<vmem>>, %arg8: memref<1x8x1xf32, #tpu.memory_space<vmem>>, %arg9: memref<1x8x1xf32, #tpu.memory_space<vmem>>, %arg10: memref<1x8x1xf32, #tpu.memory_space<vmem>>) attributes {dimension_semantics = [#tpu.dimension_semantics<parallel>, #tpu.dimension_semantics<arbitrary>, #tpu.dimension_semantics<arbitrary>], iteration_bounds = array<i64: 2, 1, 1>, scalar_prefetch = 0 : i64, scratch_operands = 3 : i64, tpu.core_type = #tpu.core_type<tc>, window_params = [{transform_indices = @transform_0, window_bounds = array<i64: 1, 8, 32>}, {transform_indices = @transform_1, window_bounds = array<i64: 1, 8, 1>}, {transform_indices = @transform_2, window_bounds = array<i64: 1, 8, 1>}, {transform_indices = @transform_3, window_bounds = array<i64: 1, 1, 1>}, {transform_indices = @transform_4, window_bounds = array<i64: 1, 1, 1>}]} {
    %c0_i32 = arith.constant 0 : i32
    %0 = arith.cmpi eq, %arg1, %c0_i32 : i32
    %c0_i32_0 = arith.constant 0 : i32
    %1 = arith.cmpi eq, %arg2, %c0_i32_0 : i32
    %2 = arith.andi %0, %1 : i1
    %3 = arith.extui %2 : i1 to i32
    %c0_i32_1 = arith.constant 0 : i32
    %4 = arith.cmpi ne, %3, %c0_i32_1 : i32
    scf.if %4 {
      %cst_32 = arith.constant 0.000000e+00 : f32
      %43 = vector.broadcast %cst_32 : f32 to vector<1x1x1xf32>
      %c0_33 = arith.constant 0 : index
      %c0_34 = arith.constant 0 : index
      %c0_35 = arith.constant 0 : index
      %44 = vector.load %arg6[%c0_33, %c0_34, %c0_35] : memref<1x1x1xf32, #tpu.memory_space<vmem>>, vector<1x1x1xf32>
      tpu.vector_store %arg6[%c0_33, %c0_34, %c0_35], %43 {strides = array<i32>} : memref<1x1x1xf32, #tpu.memory_space<vmem>>, vector<1x1x1xf32>,
      %cst_36 = arith.constant 0.000000e+00 : f32
      %45 = vector.broadcast %cst_36 : f32 to vector<1x1x1xf32>
      %c0_37 = arith.constant 0 : index
      %c0_38 = arith.constant 0 : index
      %c0_39 = arith.constant 0 : index
      %46 = vector.load %arg7[%c0_37, %c0_38, %c0_39] : memref<1x1x1xf32, #tpu.memory_space<vmem>>, vector<1x1x1xf32>
      tpu.vector_store %arg7[%c0_37, %c0_38, %c0_39], %45 {strides = array<i32>} : memref<1x1x1xf32, #tpu.memory_space<vmem>>, vector<1x1x1xf32>,
    } else {
    }
    %c0_i32_2 = arith.constant 0 : i32
    %5 = arith.cmpi eq, %arg2, %c0_i32_2 : i32
    %6 = arith.extui %5 : i1 to i32
    %c0_i32_3 = arith.constant 0 : i32
    %7 = arith.cmpi ne, %6, %c0_i32_3 : i32
    scf.if %7 {
      %cst_32 = arith.constant 0xFF800000 : f32
      %43 = vector.broadcast %cst_32 : f32 to vector<1x8x1xf32>
      %c0_33 = arith.constant 0 : index
      %c0_34 = arith.constant 0 : index
      %c0_35 = arith.constant 0 : index
      %44 = vector.load %arg8[%c0_33, %c0_34, %c0_35] : memref<1x8x1xf32, #tpu.memory_space<vmem>>, vector<1x8x1xf32>
      tpu.vector_store %arg8[%c0_33, %c0_34, %c0_35], %43 {strides = array<i32>} : memref<1x8x1xf32, #tpu.memory_space<vmem>>, vector<1x8x1xf32>,
      %cst_36 = arith.constant 0.000000e+00 : f32
      %45 = vector.broadcast %cst_36 : f32 to vector<1x8x1xf32>
      %c0_37 = arith.constant 0 : index
      %c0_38 = arith.constant 0 : index
      %c0_39 = arith.constant 0 : index
      %46 = vector.load %arg9[%c0_37, %c0_38, %c0_39] : memref<1x8x1xf32, #tpu.memory_space<vmem>>, vector<1x8x1xf32>
      tpu.vector_store %arg9[%c0_37, %c0_38, %c0_39], %45 {strides = array<i32>} : memref<1x8x1xf32, #tpu.memory_space<vmem>>, vector<1x8x1xf32>,
      %cst_40 = arith.constant 0.000000e+00 : f32
      %47 = vector.broadcast %cst_40 : f32 to vector<1x8x1xf32>
      %c0_41 = arith.constant 0 : index
      %c0_42 = arith.constant 0 : index
      %c0_43 = arith.constant 0 : index
      %48 = vector.load %arg10[%c0_41, %c0_42, %c0_43] : memref<1x8x1xf32, #tpu.memory_space<vmem>>, vector<1x8x1xf32>
      tpu.vector_store %arg10[%c0_41, %c0_42, %c0_43], %47 {strides = array<i32>} : memref<1x8x1xf32, #tpu.memory_space<vmem>>, vector<1x8x1xf32>,
    } else {
    }
    %c0 = arith.constant 0 : index
    %c0_4 = arith.constant 0 : index
    %c0_5 = arith.constant 0 : index
    %8 = vector.load %arg3[%c0, %c0_4, %c0_5] : memref<1x8x32xf32, #tpu.memory_space<vmem>>, vector<1x8x32xf32>
    %c0_6 = arith.constant 0 : index
    %c0_7 = arith.constant 0 : index
    %c0_8 = arith.constant 0 : index
    %9 = vector.load %arg4[%c0_6, %c0_7, %c0_8] : memref<1x8x1xi32, #tpu.memory_space<vmem>>, vector<1x8x1xi32>
    %10 = tpu.iota {dimensions = array<i32: 2>} : vector<1x1x32xi32>
    %c32_i32 = arith.constant 32 : i32
    %11 = arith.muli %arg2, %c32_i32 : i32
    %12 = vector.broadcast %11 : i32 to vector<1x1x32xi32>
    %13 = arith.addi %10, %12 : vector<1x1x32xi32>
    %cst = arith.constant dense<0xFF800000> : vector<1x8xf32>
    %14 = vector.multi_reduction <maximumf>, %8, %cst [2] : vector<1x8x32xf32> to vector<1x8xf32>
    %15 = vector.shape_cast %14 : vector<1x8xf32> to vector<1x8x1xf32>
    %c0_9 = arith.constant 0 : index
    %c0_10 = arith.constant 0 : index
    %c0_11 = arith.constant 0 : index
    %16 = vector.load %arg8[%c0_9, %c0_10, %c0_11] : memref<1x8x1xf32, #tpu.memory_space<vmem>>, vector<1x8x1xf32>
    %17 = arith.maximumf %16, %15 : vector<1x8x1xf32>
    %18 = vector.broadcast %17 : vector<1x8x1xf32> to vector<1x8x32xf32>
    %19 = arith.subf %8, %18 : vector<1x8x32xf32>
    %20 = math.exp %19 : vector<1x8x32xf32>
    %21 = arith.subf %16, %17 : vector<1x8x1xf32>
    %22 = math.exp %21 : vector<1x8x1xf32>
    %c0_12 = arith.constant 0 : index
    %c0_13 = arith.constant 0 : index
    %c0_14 = arith.constant 0 : index
    %23 = vector.load %arg9[%c0_12, %c0_13, %c0_14] : memref<1x8x1xf32, #tpu.memory_space<vmem>>, vector<1x8x1xf32>
    %24 = arith.mulf %22, %23 : vector<1x8x1xf32>
    %cst_15 = arith.constant dense<0.000000e+00> : vector<1x8xf32>
    %25 = vector.multi_reduction <add>, %20, %cst_15 [2] : vector<1x8x32xf32> to vector<1x8xf32>
    %26 = vector.shape_cast %25 : vector<1x8xf32> to vector<1x8x1xf32>
    %27 = arith.addf %24, %26 : vector<1x8x1xf32>
    %c0_16 = arith.constant 0 : index
    %c0_17 = arith.constant 0 : index
    %c0_18 = arith.constant 0 : index
    %28 = vector.load %arg9[%c0_16, %c0_17, %c0_18] : memref<1x8x1xf32, #tpu.memory_space<vmem>>, vector<1x8x1xf32>
    tpu.vector_store %arg9[%c0_16, %c0_17, %c0_18], %27 {strides = array<i32>} : memref<1x8x1xf32, #tpu.memory_space<vmem>>, vector<1x8x1xf32>,
    %c0_19 = arith.constant 0 : index
    %c0_20 = arith.constant 0 : index
    %c0_21 = arith.constant 0 : index
    %29 = vector.load %arg8[%c0_19, %c0_20, %c0_21] : memref<1x8x1xf32, #tpu.memory_space<vmem>>, vector<1x8x1xf32>
    tpu.vector_store %arg8[%c0_19, %c0_20, %c0_21], %17 {strides = array<i32>} : memref<1x8x1xf32, #tpu.memory_space<vmem>>, vector<1x8x1xf32>,
    %30 = vector.broadcast %13 : vector<1x1x32xi32> to vector<1x8x32xi32>
    %31 = vector.broadcast %9 : vector<1x8x1xi32> to vector<1x8x32xi32>
    %32 = arith.cmpi eq, %30, %31 : vector<1x8x32xi32>
    %c0_22 = arith.constant 0 : index
    %c0_23 = arith.constant 0 : index
    %c0_24 = arith.constant 0 : index
    %33 = vector.load %arg10[%c0_22, %c0_23, %c0_24] : memref<1x8x1xf32, #tpu.memory_space<vmem>>, vector<1x8x1xf32>
    %cst_25 = arith.constant 0.000000e+00 : f32
    %34 = vector.broadcast %cst_25 : f32 to vector<1x8x32xf32>
    %35 = arith.select %32, %8, %34 : vector<1x8x32xi1>, vector<1x8x32xf32>
    %cst_26 = arith.constant dense<0.000000e+00> : vector<1x8xf32>
    %36 = vector.multi_reduction <add>, %35, %cst_26 [2] : vector<1x8x32xf32> to vector<1x8xf32>
    %37 = vector.shape_cast %36 : vector<1x8xf32> to vector<1x8x1xf32>
    %38 = arith.addf %33, %37 : vector<1x8x1xf32>
    %c0_27 = arith.constant 0 : index
    %c0_28 = arith.constant 0 : index
    %c0_29 = arith.constant 0 : index
    %39 = vector.load %arg10[%c0_27, %c0_28, %c0_29] : memref<1x8x1xf32, #tpu.memory_space<vmem>>, vector<1x8x1xf32>
    tpu.vector_store %arg10[%c0_27, %c0_28, %c0_29], %38 {strides = array<i32>} : memref<1x8x1xf32, #tpu.memory_space<vmem>>, vector<1x8x1xf32>,
    %c0_i32_30 = arith.constant 0 : i32
    %40 = arith.cmpi eq, %arg2, %c0_i32_30 : i32
    %41 = arith.extui %40 : i1 to i32
    %c0_i32_31 = arith.constant 0 : i32
    %42 = arith.cmpi ne, %41, %c0_i32_31 : i32
    scf.if %42 {
      %c0_32 = arith.constant 0 : index
      %c0_33 = arith.constant 0 : index
      %c0_34 = arith.constant 0 : index
      %43 = vector.load %arg8[%c0_32, %c0_33, %c0_34] : memref<1x8x1xf32, #tpu.memory_space<vmem>>, vector<1x8x1xf32>
      %c0_35 = arith.constant 0 : index
      %c0_36 = arith.constant 0 : index
      %c0_37 = arith.constant 0 : index
      %44 = vector.load %arg9[%c0_35, %c0_36, %c0_37] : memref<1x8x1xf32, #tpu.memory_space<vmem>>, vector<1x8x1xf32>
      %45 = math.log %44 : vector<1x8x1xf32>
      %46 = arith.addf %43, %45 : vector<1x8x1xf32>
      %c0_38 = arith.constant 0 : index
      %c0_39 = arith.constant 0 : index
      %c0_40 = arith.constant 0 : index
      %47 = vector.load %arg10[%c0_38, %c0_39, %c0_40] : memref<1x8x1xf32, #tpu.memory_space<vmem>>, vector<1x8x1xf32>
      %48 = arith.subf %47, %46 : vector<1x8x1xf32>
      %c0_41 = arith.constant 0 : index
      %c0_42 = arith.constant 0 : index
      %c0_43 = arith.constant 0 : index
      %49 = vector.load %arg5[%c0_41, %c0_42, %c0_43] : memref<1x8x1xf32, #tpu.memory_space<vmem>>, vector<1x8x1xf32>
      %c0_44 = arith.constant 0 : index
      %c0_45 = arith.constant 0 : index
      %c0_46 = arith.constant 0 : index
      %50 = vector.load %arg6[%c0_44, %c0_45, %c0_46] : memref<1x1x1xf32, #tpu.memory_space<vmem>>, vector<1x1x1xf32>
      %cst_47 = arith.constant 0.000000e+00 : f32
      %51 = vector.broadcast %cst_47 : f32 to vector<1x8x1xf32>
      %52 = arith.cmpf ogt, %49, %51 : vector<1x8x1xf32>
      %cst_48 = arith.constant 0.000000e+00 : f32
      %53 = vector.broadcast %cst_48 : f32 to vector<1x8x1xf32>
      %54 = arith.select %52, %48, %53 : vector<1x8x1xi1>, vector<1x8x1xf32>
      %cst_49 = arith.constant dense<0.000000e+00> : vector<1x1xf32>
      %55 = vector.multi_reduction <add>, %54, %cst_49 [1] : vector<1x8x1xf32> to vector<1x1xf32>
      %56 = vector.shape_cast %55 : vector<1x1xf32> to vector<1x1x1xf32>
      %57 = arith.addf %50, %56 : vector<1x1x1xf32>
      %c0_50 = arith.constant 0 : index
      %c0_51 = arith.constant 0 : index
      %c0_52 = arith.constant 0 : index
      %58 = vector.load %arg6[%c0_50, %c0_51, %c0_52] : memref<1x1x1xf32, #tpu.memory_space<vmem>>, vector<1x1x1xf32>
      tpu.vector_store %arg6[%c0_50, %c0_51, %c0_52], %57 {strides = array<i32>} : memref<1x1x1xf32, #tpu.memory_space<vmem>>, vector<1x1x1xf32>,
      %c0_53 = arith.constant 0 : index
      %c0_54 = arith.constant 0 : index
      %c0_55 = arith.constant 0 : index
      %59 = vector.load %arg7[%c0_53, %c0_54, %c0_55] : memref<1x1x1xf32, #tpu.memory_space<vmem>>, vector<1x1x1xf32>
      %cst_56 = arith.constant dense<0.000000e+00> : vector<1x1xf32>
      %60 = vector.multi_reduction <add>, %49, %cst_56 [1] : vector<1x8x1xf32> to vector<1x1xf32>
      %61 = vector.shape_cast %60 : vector<1x1xf32> to vector<1x1x1xf32>
      %62 = arith.addf %59, %61 : vector<1x1x1xf32>
      %c0_57 = arith.constant 0 : index
      %c0_58 = arith.constant 0 : index
      %c0_59 = arith.constant 0 : index
      %63 = vector.load %arg7[%c0_57, %c0_58, %c0_59] : memref<1x1x1xf32, #tpu.memory_space<vmem>>, vector<1x1x1xf32>
      tpu.vector_store %arg7[%c0_57, %c0_58, %c0_59], %62 {strides = array<i32>} : memref<1x1x1xf32, #tpu.memory_space<vmem>>, vector<1x1x1xf32>,
    } else {
    }
    return
  }
  func.func @transform_0(%arg0: i32, %arg1: i32, %arg2: i32) -> (i32, i32, i32) {
    %c0_i32 = arith.constant 0 : i32
    return %arg0, %arg1, %arg2 : i32, i32, i32
  }
  func.func @transform_1(%arg0: i32, %arg1: i32, %arg2: i32) -> (i32, i32, i32) {
    %c0_i32 = arith.constant 0 : i32
    %c0_i32_0 = arith.constant 0 : i32
    return %arg0, %arg1, %c0_i32 : i32, i32, i32
  }
  func.func @transform_2(%arg0: i32, %arg1: i32, %arg2: i32) -> (i32, i32, i32) {
    %c0_i32 = arith.constant 0 : i32
    %c0_i32_0 = arith.constant 0 : i32
    return %arg0, %arg1, %c0_i32 : i32, i32, i32
  }
  func.func @transform_3(%arg0: i32, %arg1: i32, %arg2: i32) -> (i32, i32, i32) {
    %c0_i32 = arith.constant 0 : i32
    %c0_i32_0 = arith.constant 0 : i32
    %c0_i32_1 = arith.constant 0 : i32
    return %arg0, %c0_i32, %c0_i32_0 : i32, i32, i32
  }
  func.func @transform_4(%arg0: i32, %arg1: i32, %arg2: i32) -> (i32, i32, i32) {
    %c0_i32 = arith.constant 0 : i32
    %c0_i32_0 = arith.constant 0 : i32
    %c0_i32_1 = arith.constant 0 : i32
    return %arg0, %c0_i32, %c0_i32_0 : i32, i32, i32
  }
}

</mosaic_0001>

<bundles_post_ra>
// kernel: tpu_custom_call.1
= control target key start
LH: loop header
LB: loop body
LE: loop exit
PB: predicated region body
PF: predicated region fallthrough
CT: control target
= control target key end

     0   :  { %s607_s15 = smov 0   ;;  %s609_s16 = smov 0   ;;  %s669_s0 = inlined_call_operand.vmem [shape: f32[2,8,32], index: 0, kind: input, shape index: {}]   ;;  %s670_s1 = inlined_call_operand.vmem [shape: s32[2,8,1], index: 1, kind: input, shape index: {}]   ;;  %s671_s2 = inlined_call_operand.vmem [shape: f32[2,8,1], index: 2, kind: input, shape index: {}]   ;;  %s672_s3 = inlined_call_operand.vmem [shape: f32[2,1,1], index: 3, kind: output, shape index: {0}]   ;;  %s673_s4 = inlined_call_operand.vmem [shape: f32[2,1,1], index: 4, kind: output, shape index: {1}]  }
   0x1   :  { %s611_s17 = smov 0  }
   0x2 LB: > { %s34_s18 = sadd.s32 1, %s573_s16  ;;  %p514_p0 = scmp.ge.s32.totalorder %s577_s17, 1  ;;  %s577_s17 = sphi %s611_s17, %s15_s17   ;;  %s573_s16 = sphi %s609_s16, %s675_s16   ;;  %s569_s15 = sphi %s607_s15, %s674_s15  }
   0x3   : > { %p36_p1 = scmp.ge.s32.totalorder %s34_s18, 2  ;;  %p221_p2 = scmp.lt.s32.totalorder %s577_s17, 3 }
   0x5   : > { %s677_s18 = smov (%p36_p1, %s34_s18), 0  ;;  %p222_p3 = pnand %p514_p0, %p221_p2 }
   0x6   : > { %p267_p4 = scmp.lt.s32.totalorder (!%p222_p3), %s569_s15, 1  ;;  %vm309_vm0 = vcmask (!%p222_p3), 7168   ;;  %v579_v0 = vmov (!%p222_p3), 0.0   ;;  %vm303_vm1 = vcmask (!%p222_p3), 0   ;;  %v580_v1 = vmov (!%p222_p3), -inf  }
   0x7   : > { %225 = sbr.rel (%p222_p3) target bundleno = 493 (0x1ed), region = 32  ;;  %311 = vst.msk [vmem:[#allocation3] sm:$0xff] (!%p222_p3), %vm309_vm0, %v579_v0  ;;  %312 = vst.msk [vmem:[#allocation4] sm:$0xff] (!%p222_p3), %vm309_vm0, %v579_v0  ;;  %vm320_vm2 = vcmask (!%p222_p3), 261120   ;;  %v581_v14 = vmov (!%p222_p3), 0   ;;  %v315_v23 = vlaneseq (!%p222_p3) }
   0x8   : > { %310 = vst.msk [vmem:[#allocation2] sm:$0xff] (!%p222_p3), %vm309_vm0, %v580_v1  ;;  %547 = vset.pattern.permute.xlu0 (!%p222_p3), %v581_v14  ;;  %548 = vset.pattern.permute.xlu1 (!%p222_p3), %v581_v14 }
   0x9   : > { %v316_v24 = vand.u32 (!%p222_p3), 127, %v315_v23 }
   0xe   : > { %s679_s15 = smov (!%p267_p4, %s569_s15), 1  ;;  %v337_v32 = vld [vmem:[#allocation3] sm:$0xff]  ;;  %v350_v36 = vld [vmem:[#allocation4] sm:$0xff] }
   0xf   : > { %s515_s19 = sshll.u32 %s679_s15, 3  ;;  %s631_s22 = scalar_lea.vmem %s672_s3, %s679_s15  ;;  %v324_v16 = vld [vmem:[#allocation2] sm:$0xff] }
  0x10   : > { %s276_s25 = scalar_lea.vmem %s669_s0, %s515_s19  ;;  %s290_s28 = scalar_lea.vmem %s671_s2, %s515_s19  ;;  %304 = vst.msk [vmem:[%s631_s22] sm:$0x1] %vm303_vm1, %v579_v0 }
  0x11   : > { %s296_s5 = scalar_lea.vmem %s673_s4, %s679_s15  ;;  %v313_v2 = vld [vmem:[%s276_s25] sm:$0xff]  ;;  %s283_s8 = scalar_lea.vmem %s670_s1, %s515_s19 }
  0x12   : > { %v367_v3 = vld [vmem:[%s290_s28] sm:$0xff]  ;;  %305 = vst.msk [vmem:[%s296_s5] sm:$0x1] %vm303_vm1, %v579_v0  ;;  %v321_v4 = vsel %vm320_vm2, %v313_v2, -inf }
  0x13   : > { %v382_v5 = vsel %vm309_vm0, %v367_v3, 0.0  ;;  %322 = vmax.xlane.f32.xlu0 %v321_v4  ;;  %v314_v15 = vld [vmem:[%s283_s8] sm:$0xff]  ;;  %vm369_vm4 = vcmp.gt.f32.partialorder %v367_v3, 0.0 }
  0x14   : > { %v383_v6 = vrot.slane %v382_v5, 4  ;;  %347 = vperm.xlu1 %548, %v314_v15  }
  0x16   : > { %v384_v7 = vadd.f32 %v383_v6, %v382_v5 }
  0x17   : > { %v368_v53 = vld [vmem:[%s631_s22] sm:$0x1] }
  0x18   : > { %v385_v8 = vrot.slane %v384_v7, 2 }
  0x19   : > { %v381_v11 = vld [vmem:[%s296_s5] sm:$0x1] }
  0x1a   : > { %v386_v9 = vadd.f32 %v385_v8, %v384_v7 }
  0x1c   : > { %v387_v10 = vrot.slane %v386_v9, 1 }
  0x1e   : > { %v388_v12 = vadd.f32 %v387_v10, %v386_v9 }
  0x20   : > { %v389_v13 = vadd.f32 %v388_v12, %v381_v11 }
  0x22   : > { %390 = vst.msk [vmem:[%s296_s5] sm:$0x1] %vm303_vm1, %v389_v13 }
  0x93   : > { %v348_v25 = vpop.permute.xlu1 %347 }
  0x94   : > { %vm349_vm3 = vcmp.eq.s32.totalorder %v316_v24, %v348_v25 }
  0x95   : > { %v351_v27 = vsel %vm349_vm3, %v313_v2, 0.0 }
  0x96   : > { %v352_v29 = vsel %vm320_vm2, %v351_v27, 0.0 }
  0xa0   : > { %v323_v17 = vpop.xlane.xlu0 %322 }
  0xa1   : > { %v325_v18 = vmax.f32 %v324_v16, %v323_v17 }
  0xa3   : > { %v334_v19 = vsub.f32 %v324_v16, %v325_v18  ;;  %345 = vst.msk [vmem:[#allocation2] sm:$0xff] %vm309_vm0, %v325_v18  ;;  %328 = vperm.xlu0 %547, %v325_v18  }
  0xa5   : > { %v335_v30 = vmul.f32 1.442695, %v334_v19 }
  0xaa   : > { %v360_v42 = vld [vmem:[#allocation2] sm:$0xff] }
 0x122   : > { %v329_v20 = vpop.permute.xlu0 %328 }
 0x123   : > { %v331_v21 = vsub.f32 %v313_v2, %v329_v20 }
 0x125   : > { %v332_v22 = vmul.f32 1.442695, %v331_v21 }
 0x127   : > { %549 = vpow2.f32 %v332_v22 }
 0x128   : > { %551 = vpow2.f32 %v335_v30 }
 0x131   : > { %v550_v26 = vpop.eup %549 }
 0x132   : > { %v339_v28 = vsel %vm320_vm2, %v550_v26, 0.0  ;;  %v552_v31 = vpop.eup %551 }
 0x133   : > { %340 = vadd.xlane.f32.xlu1 %v339_v28  ;;  %v338_v33 = vmul.f32 %v552_v31, %v337_v32 }
 0x137   : > { %353 = vadd.xlane.f32.xlu1 %v352_v29 }
 0x1c0   : > { %v341_v34 = vpop.xlane.xlu1 %340 }
 0x1c1   : > { %v342_v35 = vadd.f32 %v341_v34, %v338_v33 }
 0x1c3   : > { %344 = vst.msk [vmem:[#allocation3] sm:$0xff] %vm309_vm0, %v342_v35 }
 0x1c4   : > { %v354_v37 = vpop.xlane.xlu1 %353 }
 0x1c5   : > { %v355_v38 = vadd.f32 %v354_v37, %v350_v36 }
 0x1c7   : > { %356 = vst.msk [vmem:[#allocation4] sm:$0xff] %vm309_vm0, %v355_v38 }
 0x1ca   : > { %v361_v39 = vld [vmem:[#allocation3] sm:$0xff] }
 0x1cb   : > { %553 = vlog2.f32 %v361_v39 }
 0x1ce   : > { %v365_v43 = vld [vmem:[#allocation4] sm:$0xff] }
 0x1d5   : > { %v554_v40 = vpop.eup %553 }
 0x1d6   : > { %v363_v41 = vmul.f32 0.6931472, %v554_v40 }
 0x1d8   : > { %v364_v44 = vadd.f32 %v363_v41, %v360_v42 }
 0x1da   : > { %v366_v45 = vsub.f32 %v365_v43, %v364_v44 }
 0x1dc   : > { %v370_v46 = vsel %vm369_vm4, %v366_v45, 0.0 }
 0x1dd   : > { %v371_v47 = vsel %vm309_vm0, %v370_v46, 0.0 }
 0x1de   : > { %v372_v48 = vrot.slane %v371_v47, 4 }
 0x1e0   : > { %v373_v49 = vadd.f32 %v372_v48, %v371_v47 }
 0x1e2   : > { %v374_v50 = vrot.slane %v373_v49, 2 }
 0x1e4   : > { %v375_v51 = vadd.f32 %v374_v50, %v373_v49 }
 0x1e6   : > { %v376_v52 = vrot.slane %v375_v51, 1 }
 0x1e8   : > { %v377_v54 = vadd.f32 %v376_v52, %v375_v51 }
 0x1ea   : > { %v378_v55 = vadd.f32 %v377_v54, %v368_v53 }
 0x1ec   : > { %380 = vst.msk [vmem:[%s631_s22] sm:$0x1] %vm303_vm1, %v378_v55 }
 0x1ed PF: > { %s15_s17 = sadd.s32 1, %s577_s17   ;;  %s674_s15 = smov %s573_s16 }
 0x1ee   : > { %p12_p5 = scmp.ge.s32.totalorder %s15_s17, 4   ;;  %s675_s16 = smov %s677_s18 }
 0x1f0   :  { %14 = sbr.rel (!%p12_p5) target bundleno = 2 (0x2), region = 92 }

</bundles_post_ra>
